<compile_context>
chip_gen: v5e
topology: v5e:2x2
jax: 0.10.0
libtpu: 0.0.40
codegen_flags: <defaults>
</compile_context>

<pallas_src>
import functools

import numpy as np
import jax
import jax.numpy as jnp
from jax.experimental import pallas as pl
from jax.experimental.pallas import tpu as pltpu

EPS = 1e-5  # PyTorch nn.LayerNorm default eps


def _round_up(x, m):
    return (x + m - 1) // m * m


def _pad2d(x, rows, cols):
    return jnp.pad(x, ((0, rows - x.shape[0]), (0, cols - x.shape[1])))


def _vmem_limit_bytes():
    # Generation-aware scoped-VMEM limit: leave ~16 MiB headroom under physical,
    # cap at 96 MiB (v5e/v6e: 128 MiB physical, v7x: 64 MiB physical).
    try:
        cap = int(pltpu.get_tpu_info().vmem_capacity_bytes)
    except Exception:
        cap = 64 * 1024 * 1024
    return int(min(max(cap - 16 * 1024 * 1024, 32 * 1024 * 1024), 96 * 1024 * 1024))


def _layernorm_padded(x, gamma, beta, h_true):
    # Padded lanes (>= h_true) of x are exactly zero; mask them out of the
    # exact two-pass variance so statistics use only the real H lanes.
    lane = jax.lax.broadcasted_iota(jnp.int32, x.shape, 1)
    mu = jnp.sum(x, axis=-1, keepdims=True) / h_true
    xc = jnp.where(lane < h_true, x - mu, 0.0)
    var = jnp.sum(xc * xc, axis=-1, keepdims=True) / h_true
    return xc * jax.lax.rsqrt(var + EPS) * gamma + beta


# --------------------------- fused MPNN kernel ---------------------------

def mpnn_kernel(
        # scalar prefetch (SMEM): per-chunk schedule
        ct_ref, first_ref, last_ref,
        # streamed / tiled inputs (VMEM)
        tgt_ref, hev_ref, hv_ref, inv_ref,
        w1_ref, b1_ref, w2_ref, b2_ref, w3_ref, b3_ref,
        g1_ref, be1_ref, d1_ref, db1_ref, d2_ref, db2_ref, g2_ref, be2_ref,
        # output
        out_ref,
        # scratch
        acc_ref,
        *, h_true):
    del ct_ref  # only used inside the index maps
    c = pl.program_id(0)

    @pl.when(first_ref[c] == 1)
    def _():
        acc_ref[...] = jnp.zeros_like(acc_ref)

    # ---- message MLP on this edge chunk: W3(relu(W2(relu(W1([hE|hS|hT]))))) ----
    # bf16 MXU operands (single fused K = 3H dot), f32 accumulation + elementwise.
    m = jnp.dot(hev_ref[...], w1_ref[...],
                preferred_element_type=jnp.float32) + b1_ref[...]
    m = jnp.maximum(m, 0.0)
    m = jnp.dot(m.astype(jnp.bfloat16), w2_ref[...],
                preferred_element_type=jnp.float32) + b2_ref[...]
    m = jnp.maximum(m, 0.0)
    m = jnp.dot(m.astype(jnp.bfloat16), w3_ref[...],
                preferred_element_type=jnp.float32) + b3_ref[...]        # [TILE_E, Hp]

    # ---- windowed scatter-sum into the node-tile accumulator ----
    # tgt holds TILE-LOCAL target ids; padded edges carry TILE_N -> zero column.
    tgt = tgt_ref[...]                                                   # [1, TILE_E]
    tile_n = acc_ref.shape[0]
    onehot = (jax.lax.broadcasted_iota(jnp.int32, (tile_n, tgt.shape[1]), 0)
              == tgt).astype(jnp.bfloat16)                               # [TILE_N, TILE_E]
    acc_ref[...] += jnp.dot(onehot, m.astype(jnp.bfloat16),
                            preferred_element_type=jnp.float32)

    # ---- on this node tile's last chunk: mean, res+LN1, FFN, res+LN2 ----
    @pl.when(last_ref[c] == 1)
    def _():
        dh = acc_ref[...] * inv_ref[...]                                 # scatter-mean
        y = _layernorm_padded(hv_ref[...] + dh, g1_ref[...], be1_ref[...], h_true)
        d = jnp.dot(y.astype(jnp.bfloat16), d1_ref[...],
                    preferred_element_type=jnp.float32) + db1_ref[...]
        d = jnp.maximum(d, 0.0)
        d = jnp.dot(d.astype(jnp.bfloat16), d2_ref[...],
                    preferred_element_type=jnp.float32) + db2_ref[...]
        out_ref[...] = _layernorm_padded(y + d, g2_ref[...], be2_ref[...], h_true)


# -------------------------------- wrapper --------------------------------

def mpnn_layer(h_V, h_E, edge_idx, params, *, tile_n=None, tile_e=None):
    N, H = h_V.shape
    E = h_E.shape[0]
    H_pad = _round_up(H, 128)
    K_pad = _round_up(3 * H, 128)
    F_pad = _round_up(4 * H, 128)

    if tile_n is None:
        TILE_N = min(512, _round_up(N, 8))
    else:
        TILE_N = _round_up(tile_n, 8)
    N_pad = _round_up(N, TILE_N)
    n_tiles = N_pad // TILE_N

    if tile_e is None:
        avg = max(1, -(-E // n_tiles))                 # ceil(E / n_tiles)
        n_chunks_t = max(1, -(-avg // 1024))           # target chunks per tile (<=1024 rows)
        TILE_E = min(1024, max(128, _round_up(-(-avg // n_chunks_t), 128)))
    else:
        TILE_E = max(128, _round_up(tile_e, 128))

    # TODO(synk): the bucketed edge schedule below is built on the host with
    # numpy (edge_idx must be concrete), so this wrapper is not jit-able as-is.
    src = np.asarray(edge_idx[0]).astype(np.int32)
    tgt = np.asarray(edge_idx[1]).astype(np.int32)

    order = np.argsort(tgt, kind="stable")
    tile_of_edge = tgt[order] // TILE_N
    lo = np.searchsorted(tile_of_edge, np.arange(n_tiles), side="left")
    hi = np.searchsorted(tile_of_edge, np.arange(n_tiles), side="right")
    cnt = (hi - lo).astype(np.int64)
    chunks = np.maximum(1, -(-cnt // TILE_E))          # >=1 chunk per tile
    total_chunks = int(chunks.sum())
    total_rows = total_chunks * TILE_E
    row_off = np.zeros((n_tiles,), np.int64)
    row_off[1:] = np.cumsum(chunks * TILE_E)[:-1]

    # Per bucketed-row source indices (sentinels map to zero-feature pad rows).
    edge_map = np.full((total_rows,), E, np.int32)
    src_map = np.full((total_rows,), N, np.int32)
    tgt_map = np.full((total_rows,), N, np.int32)
    local_tgt = np.full((total_rows,), TILE_N, np.int32)   # out of [0,TILE_N) -> no scatter
    for i in range(n_tiles):
        k = int(cnt[i])
        if k == 0:
            continue
        sel = order[lo[i]:hi[i]]
        r = slice(int(row_off[i]), int(row_off[i]) + k)
        edge_map[r] = sel
        src_map[r] = src[sel]
        tgt_map[r] = tgt[sel]
        local_tgt[r] = tgt[sel] - i * TILE_N

    # Per-chunk schedule scalars (SMEM via scalar prefetch).
    chunk_tile = np.repeat(np.arange(n_tiles, dtype=np.int32), chunks)
    coff = np.zeros((n_tiles + 1,), np.int64)
    coff[1:] = np.cumsum(chunks)
    is_first = np.zeros((total_chunks,), np.int32)
    is_last = np.zeros((total_chunks,), np.int32)
    is_first[coff[:-1]] = 1
    is_last[coff[1:] - 1] = 1

    # ---- JAX glue: bf16 gathers, lane-dense padding, weights ----
    hV_bf = h_V.astype(jnp.bfloat16)
    hE_bf = h_E.astype(jnp.bfloat16)
    hE1 = jnp.concatenate([hE_bf, jnp.zeros((1, H), jnp.bfloat16)], axis=0)   # row E = pad
    hV1 = jnp.concatenate([hV_bf, jnp.zeros((1, H), jnp.bfloat16)], axis=0)   # row N = pad
    hEV = jnp.concatenate(
        [jnp.take(hE1, jnp.asarray(edge_map), axis=0),
         jnp.take(hV1, jnp.asarray(src_map), axis=0),
         jnp.take(hV1, jnp.asarray(tgt_map), axis=0)], axis=-1)               # [rows, 3H] bf16
    hEV = jnp.pad(hEV, ((0, 0), (0, K_pad - 3 * H)))

    tgt_loc = jnp.asarray(local_tgt).reshape(1, total_rows)

    hV_p = _pad2d(h_V.astype(jnp.float32), N_pad, H_pad)
    deg = np.bincount(tgt, minlength=N_pad).astype(np.float32)
    inv_p = jnp.asarray((1.0 / np.maximum(deg, 1.0)).reshape(N_pad, 1))

    def wpad(w, r, c):
        return _pad2d(w.astype(jnp.float32), r, c).astype(jnp.bfloat16)

    def vpad(b, c):
        return _pad2d(b.astype(jnp.float32), 1, c)

    w1f = wpad(params["w1"], K_pad, H_pad)      # fused [3H, H] -> [K_pad, H_pad]
    b1 = vpad(params["b1"], H_pad)
    w2 = wpad(params["w2"], H_pad, H_pad)
    b2 = vpad(params["b2"], H_pad)
    w3 = wpad(params["w3"], H_pad, H_pad)
    b3 = vpad(params["b3"], H_pad)
    g1 = vpad(params["g1"], H_pad)
    be1 = vpad(params["be1"], H_pad)
    d1 = wpad(params["d1"], H_pad, F_pad)
    db1 = vpad(params["db1"], F_pad)
    d2 = wpad(params["d2"], F_pad, H_pad)
    db2 = vpad(params["db2"], H_pad)
    g2 = vpad(params["g2"], H_pad)
    be2 = vpad(params["be2"], H_pad)

    const = lambda c, ct, fi, la: (0, 0)

    grid_spec = pltpu.PrefetchScalarGridSpec(
        num_scalar_prefetch=3,
        grid=(total_chunks,),
        in_specs=[
            pl.BlockSpec((1, TILE_E), lambda c, ct, fi, la: (0, c)),           # tile-local tgt
            pl.BlockSpec((TILE_E, K_pad), lambda c, ct, fi, la: (c, 0)),       # [hE|hS|hT]
            pl.BlockSpec((TILE_N, H_pad), lambda c, ct, fi, la: (ct[c], 0)),   # h_V node tile
            pl.BlockSpec((TILE_N, 1), lambda c, ct, fi, la: (ct[c], 0)),       # 1/deg node tile
            pl.BlockSpec((K_pad, H_pad), const),   # W1 (fused, K = 3H)
            pl.BlockSpec((1, H_pad), const),       # b1
            pl.BlockSpec((H_pad, H_pad), const),   # W2
            pl.BlockSpec((1, H_pad), const),       # b2
            pl.BlockSpec((H_pad, H_pad), const),   # W3
            pl.BlockSpec((1, H_pad), const),       # b3
            pl.BlockSpec((1, H_pad), const),       # LN1 gamma
            pl.BlockSpec((1, H_pad), const),       # LN1 beta
            pl.BlockSpec((H_pad, F_pad), const),   # FFN W_in
            pl.BlockSpec((1, F_pad), const),       # FFN b_in
            pl.BlockSpec((F_pad, H_pad), const),   # FFN W_out
            pl.BlockSpec((1, H_pad), const),       # FFN b_out
            pl.BlockSpec((1, H_pad), const),       # LN2 gamma
            pl.BlockSpec((1, H_pad), const),       # LN2 beta
        ],
        out_specs=pl.BlockSpec((TILE_N, H_pad), lambda c, ct, fi, la: (ct[c], 0)),
        scratch_shapes=[pltpu.VMEM((TILE_N, H_pad), jnp.float32)],
    )

    out_pad = pl.pallas_call(
        functools.partial(mpnn_kernel, h_true=H),
        out_shape=jax.ShapeDtypeStruct((N_pad, H_pad), jnp.float32),
        grid_spec=grid_spec,
        compiler_params=pltpu.CompilerParams(
            # the chunk axis carries the per-tile accumulator + output revisit
            dimension_semantics=("arbitrary",),
            vmem_limit_bytes=_vmem_limit_bytes()),
    )(jnp.asarray(chunk_tile), jnp.asarray(is_first), jnp.asarray(is_last),
      tgt_loc, hEV, hV_p, inv_p,
      w1f, b1, w2, b2, w3, b3, g1, be1, d1, db1, d2, db2, g2, be2)

    return out_pad[:N, :H]


# --------------------------- params / reference ---------------------------

def init_params(key, H):
    ks = jax.random.split(key, 5)

    def lin(k, fan_in, fan_out):
        bound = 1.0 / jnp.sqrt(fan_in)
        kw, kb = jax.random.split(k)
        w = jax.random.uniform(kw, (fan_in, fan_out), jnp.float32, -bound, bound)
        b = jax.random.uniform(kb, (1, fan_out), jnp.float32, -bound, bound)
        return w, b

    w1, b1 = lin(ks[0], 3 * H, H)
    w2, b2 = lin(ks[1], H, H)
    w3, b3 = lin(ks[2], H, H)
    d1, db1 = lin(ks[3], H, 4 * H)
    d2, db2 = lin(ks[4], 4 * H, H)
    return dict(
        w1=w1, b1=b1, w2=w2, b2=b2, w3=w3, b3=b3,
        g1=jnp.ones((1, H), jnp.float32), be1=jnp.zeros((1, H), jnp.float32),
        d1=d1, db1=db1, d2=d2, db2=db2,
        g2=jnp.ones((1, H), jnp.float32), be2=jnp.zeros((1, H), jnp.float32),
    )


def mpnn_ref(h_V, h_E, edge_idx, params):
    # pure-JAX f32 reference mirroring the PyTorch forward (eval mode)
    src, tgt = edge_idx[0], edge_idx[1]
    h_EV = jnp.concatenate([h_E, h_V[src], h_V[tgt]], axis=-1)
    m = jax.nn.relu(h_EV @ params["w1"] + params["b1"][0])
    m = jax.nn.relu(m @ params["w2"] + params["b2"][0])
    m = m @ params["w3"] + params["b3"][0]
    N = h_V.shape[0]
    dh_sum = jax.ops.segment_sum(m, tgt, num_segments=N)
    cnt = jax.ops.segment_sum(jnp.ones((m.shape[0],), m.dtype), tgt, num_segments=N)
    dh = dh_sum / jnp.maximum(cnt, 1.0)[:, None]

    def ln(x, g, b):
        mu = x.mean(-1, keepdims=True)
        var = ((x - mu) ** 2).mean(-1, keepdims=True)
        return (x - mu) / jnp.sqrt(var + EPS) * g[0] + b[0]

    y = ln(h_V + dh, params["g1"], params["be1"])
    d = jax.nn.relu(y @ params["d1"] + params["db1"][0]) @ params["d2"] + params["db2"][0]
    return ln(y + d, params["g2"], params["be2"])


if __name__ == "__main__":
    key = jax.random.PRNGKey(0)

    def run_case(N, H, E, k, **tiles):
        k_v, k_e, k_s, k_t, k_p = jax.random.split(k, 5)
        h_V = jax.random.normal(k_v, (N, H), jnp.float32)
        h_E = jax.random.normal(k_e, (E, H), jnp.float32)
        src = jax.random.randint(k_s, (E,), 0, N).astype(jnp.int32)
        tgt = jax.random.randint(k_t, (E,), 0, N).astype(jnp.int32)
        edge_idx = jnp.stack([src, tgt], axis=0)                 # [2, E]
        params = init_params(k_p, H)

        out = jax.block_until_ready(mpnn_layer(h_V, h_E, edge_idx, params, **tiles))
        ref = mpnn_ref(h_V, h_E, edge_idx, params)
        assert out.shape == (N, H)
        err = float(jnp.max(jnp.abs(out - ref)))
        # bf16 MXU operands vs f32 reference -> slightly loosened tolerance
        assert jnp.allclose(out, ref, atol=5e-2, rtol=5e-2), f"mismatch, max|diff|={err}"

    k1, k2, k3 = jax.random.split(key, 3)
    run_case(8, 32, 16, k1)                               # single tile, single chunk
    run_case(300, 32, 1100, k2)                           # multi-chunk accumulation
    run_case(300, 32, 1100, k3, tile_n=128, tile_e=256)   # multi node-tile revisit + padding

    print("KERNEL_OK")
</pallas_src>

<mosaic_0001>
module attributes {stable_mosaic.version = 11 : i64} {
  func.func @mpnn_kernel(%arg0: i32, %arg1: memref<1xi32, #tpu.memory_space<smem>>, %arg2: memref<1xi32, #tpu.memory_space<smem>>, %arg3: memref<1xi32, #tpu.memory_space<smem>>, %arg4: memref<1x128xi32, #tpu.memory_space<vmem>>, %arg5: memref<128x128xbf16, #tpu.memory_space<vmem>>, %arg6: memref<8x128xf32, #tpu.memory_space<vmem>>, %arg7: memref<8x1xf32, #tpu.memory_space<vmem>>, %arg8: memref<128x128xbf16, #tpu.memory_space<vmem>>, %arg9: memref<1x128xf32, #tpu.memory_space<vmem>>, %arg10: memref<128x128xbf16, #tpu.memory_space<vmem>>, %arg11: memref<1x128xf32, #tpu.memory_space<vmem>>, %arg12: memref<128x128xbf16, #tpu.memory_space<vmem>>, %arg13: memref<1x128xf32, #tpu.memory_space<vmem>>, %arg14: memref<1x128xf32, #tpu.memory_space<vmem>>, %arg15: memref<1x128xf32, #tpu.memory_space<vmem>>, %arg16: memref<128x128xbf16, #tpu.memory_space<vmem>>, %arg17: memref<1x128xf32, #tpu.memory_space<vmem>>, %arg18: memref<128x128xbf16, #tpu.memory_space<vmem>>, %arg19: memref<1x128xf32, #tpu.memory_space<vmem>>, %arg20: memref<1x128xf32, #tpu.memory_space<vmem>>, %arg21: memref<1x128xf32, #tpu.memory_space<vmem>>, %arg22: memref<8x128xf32, #tpu.memory_space<vmem>>, %arg23: memref<8x128xf32, #tpu.memory_space<vmem>>) attributes {dimension_semantics = [#tpu.dimension_semantics<arbitrary>], iteration_bounds = array<i64: 1>, scalar_prefetch = 3 : i64, scratch_operands = 1 : i64, tpu.core_type = #tpu.core_type<tc>, window_params = [{transform_indices = @transform_0, window_bounds = array<i64: 1, 128>}, {transform_indices = @transform_1, window_bounds = array<i64: 128, 128>}, {transform_indices = @transform_2, window_bounds = array<i64: 8, 128>}, {transform_indices = @transform_3, window_bounds = array<i64: 8, 1>}, {pipeline_mode = #tpu.pipeline_mode<synchronous>, transform_indices = @transform_4, window_bounds = array<i64: 128, 128>}, {pipeline_mode = #tpu.pipeline_mode<synchronous>, transform_indices = @transform_5, window_bounds = array<i64: 1, 128>}, {pipeline_mode = #tpu.pipeline_mode<synchronous>, transform_indices = @transform_6, window_bounds = array<i64: 128, 128>}, {pipeline_mode = #tpu.pipeline_mode<synchronous>, transform_indices = @transform_7, window_bounds = array<i64: 1, 128>}, {pipeline_mode = #tpu.pipeline_mode<synchronous>, transform_indices = @transform_8, window_bounds = array<i64: 128, 128>}, {pipeline_mode = #tpu.pipeline_mode<synchronous>, transform_indices = @transform_9, window_bounds = array<i64: 1, 128>}, {pipeline_mode = #tpu.pipeline_mode<synchronous>, transform_indices = @transform_10, window_bounds = array<i64: 1, 128>}, {pipeline_mode = #tpu.pipeline_mode<synchronous>, transform_indices = @transform_11, window_bounds = array<i64: 1, 128>}, {pipeline_mode = #tpu.pipeline_mode<synchronous>, transform_indices = @transform_12, window_bounds = array<i64: 128, 128>}, {pipeline_mode = #tpu.pipeline_mode<synchronous>, transform_indices = @transform_13, window_bounds = array<i64: 1, 128>}, {pipeline_mode = #tpu.pipeline_mode<synchronous>, transform_indices = @transform_14, window_bounds = array<i64: 128, 128>}, {pipeline_mode = #tpu.pipeline_mode<synchronous>, transform_indices = @transform_15, window_bounds = array<i64: 1, 128>}, {pipeline_mode = #tpu.pipeline_mode<synchronous>, transform_indices = @transform_16, window_bounds = array<i64: 1, 128>}, {pipeline_mode = #tpu.pipeline_mode<synchronous>, transform_indices = @transform_17, window_bounds = array<i64: 1, 128>}, {transform_indices = @transform_18, window_bounds = array<i64: 8, 128>}]} {
    %0 = arith.index_cast %arg0 : i32 to index
    %1 = memref.load %arg2[%0] : memref<1xi32, #tpu.memory_space<smem>>
    %c1_i32 = arith.constant 1 : i32
    %2 = arith.cmpi eq, %1, %c1_i32 : i32
    %3 = arith.extui %2 : i1 to i32
    %c0_i32 = arith.constant 0 : i32
    %4 = arith.cmpi ne, %3, %c0_i32 : i32
    scf.if %4 {
      %cst_26 = arith.constant 0.000000e+00 : f32
      %44 = vector.broadcast %cst_26 : f32 to vector<8x128xf32>
      %c0_27 = arith.constant 0 : index
      %c0_28 = arith.constant 0 : index
      %45 = vector.load %arg23[%c0_27, %c0_28] : memref<8x128xf32, #tpu.memory_space<vmem>>, vector<8x128xf32>
      tpu.vector_store %arg23[%c0_27, %c0_28], %44 {strides = array<i32>} : memref<8x128xf32, #tpu.memory_space<vmem>>, vector<8x128xf32>,
    } else {
    }
    %c0 = arith.constant 0 : index
    %c0_0 = arith.constant 0 : index
    %5 = vector.load %arg5[%c0, %c0_0] : memref<128x128xbf16, #tpu.memory_space<vmem>>, vector<128x128xbf16>
    %c0_1 = arith.constant 0 : index
    %c0_2 = arith.constant 0 : index
    %6 = vector.load %arg8[%c0_1, %c0_2] : memref<128x128xbf16, #tpu.memory_space<vmem>>, vector<128x128xbf16>
    %cst = arith.constant dense<0.000000e+00> : vector<128x128xf32>
    %7 = tpu.matmul %5, %6, %cst {dimension_numbers = #tpu.dot_dimension_numbers<[1], [0], [0], [1], [0, 0, 1, 1], [], []>} : vector<128x128xbf16>, vector<128x128xbf16>, vector<128x128xf32> -> vector<128x128xf32>
    %c0_3 = arith.constant 0 : index
    %c0_4 = arith.constant 0 : index
    %8 = vector.load %arg9[%c0_3, %c0_4] : memref<1x128xf32, #tpu.memory_space<vmem>>, vector<1x128xf32>
    %9 = vector.broadcast %8 : vector<1x128xf32> to vector<128x128xf32>
    %10 = arith.addf %7, %9 : vector<128x128xf32>
    %cst_5 = arith.constant 0.000000e+00 : f32
    %11 = vector.broadcast %cst_5 : f32 to vector<128x128xf32>
    %12 = arith.maximumf %10, %11 : vector<128x128xf32>
    %13 = arith.truncf %12 : vector<128x128xf32> to vector<128x128xbf16>
    %c0_6 = arith.constant 0 : index
    %c0_7 = arith.constant 0 : index
    %14 = vector.load %arg10[%c0_6, %c0_7] : memref<128x128xbf16, #tpu.memory_space<vmem>>, vector<128x128xbf16>
    %cst_8 = arith.constant dense<0.000000e+00> : vector<128x128xf32>
    %15 = tpu.matmul %13, %14, %cst_8 {dimension_numbers = #tpu.dot_dimension_numbers<[1], [0], [0], [1], [0, 0, 1, 1], [], []>} : vector<128x128xbf16>, vector<128x128xbf16>, vector<128x128xf32> -> vector<128x128xf32>
    %c0_9 = arith.constant 0 : index
    %c0_10 = arith.constant 0 : index
    %16 = vector.load %arg11[%c0_9, %c0_10] : memref<1x128xf32, #tpu.memory_space<vmem>>, vector<1x128xf32>
    %17 = vector.broadcast %16 : vector<1x128xf32> to vector<128x128xf32>
    %18 = arith.addf %15, %17 : vector<128x128xf32>
    %cst_11 = arith.constant 0.000000e+00 : f32
    %19 = vector.broadcast %cst_11 : f32 to vector<128x128xf32>
    %20 = arith.maximumf %18, %19 : vector<128x128xf32>
    %21 = arith.truncf %20 : vector<128x128xf32> to vector<128x128xbf16>
    %c0_12 = arith.constant 0 : index
    %c0_13 = arith.constant 0 : index
    %22 = vector.load %arg12[%c0_12, %c0_13] : memref<128x128xbf16, #tpu.memory_space<vmem>>, vector<128x128xbf16>
    %cst_14 = arith.constant dense<0.000000e+00> : vector<128x128xf32>
    %23 = tpu.matmul %21, %22, %cst_14 {dimension_numbers = #tpu.dot_dimension_numbers<[1], [0], [0], [1], [0, 0, 1, 1], [], []>} : vector<128x128xbf16>, vector<128x128xbf16>, vector<128x128xf32> -> vector<128x128xf32>
    %c0_15 = arith.constant 0 : index
    %c0_16 = arith.constant 0 : index
    %24 = vector.load %arg13[%c0_15, %c0_16] : memref<1x128xf32, #tpu.memory_space<vmem>>, vector<1x128xf32>
    %25 = vector.broadcast %24 : vector<1x128xf32> to vector<128x128xf32>
    %26 = arith.addf %23, %25 : vector<128x128xf32>
    %c0_17 = arith.constant 0 : index
    %c0_18 = arith.constant 0 : index
    %27 = vector.load %arg4[%c0_17, %c0_18] : memref<1x128xi32, #tpu.memory_space<vmem>>, vector<1x128xi32>
    %28 = tpu.iota {dimensions = array<i32: 0>} : vector<8x128xi32>
    %29 = vector.broadcast %27 : vector<1x128xi32> to vector<8x128xi32>
    %30 = arith.cmpi eq, %28, %29 : vector<8x128xi32>
    %31 = arith.extui %30 : vector<8x128xi1> to vector<8x128xi32>
    %32 = arith.sitofp %31 : vector<8x128xi32> to vector<8x128xf32>
    %33 = arith.truncf %32 : vector<8x128xf32> to vector<8x128xbf16>
    %c0_19 = arith.constant 0 : index
    %c0_20 = arith.constant 0 : index
    %34 = vector.load %arg23[%c0_19, %c0_20] : memref<8x128xf32, #tpu.memory_space<vmem>>, vector<8x128xf32>
    %35 = arith.truncf %26 : vector<128x128xf32> to vector<128x128xbf16>
    %cst_21 = arith.constant dense<0.000000e+00> : vector<8x128xf32>
    %36 = tpu.matmul %33, %35, %cst_21 {dimension_numbers = #tpu.dot_dimension_numbers<[1], [0], [0], [1], [0, 0, 1, 1], [], []>} : vector<8x128xbf16>, vector<128x128xbf16>, vector<8x128xf32> -> vector<8x128xf32>
    %37 = arith.addf %34, %36 : vector<8x128xf32>
    %c0_22 = arith.constant 0 : index
    %c0_23 = arith.constant 0 : index
    %38 = vector.load %arg23[%c0_22, %c0_23] : memref<8x128xf32, #tpu.memory_space<vmem>>, vector<8x128xf32>
    tpu.vector_store %arg23[%c0_22, %c0_23], %37 {strides = array<i32>} : memref<8x128xf32, #tpu.memory_space<vmem>>, vector<8x128xf32>,
    %39 = arith.index_cast %arg0 : i32 to index
    %40 = memref.load %arg3[%39] : memref<1xi32, #tpu.memory_space<smem>>
    %c1_i32_24 = arith.constant 1 : i32
    %41 = arith.cmpi eq, %40, %c1_i32_24 : i32
    %42 = arith.extui %41 : i1 to i32
    %c0_i32_25 = arith.constant 0 : i32
    %43 = arith.cmpi ne, %42, %c0_i32_25 : i32
    scf.if %43 {
      %c0_26 = arith.constant 0 : index
      %c0_27 = arith.constant 0 : index
      %44 = vector.load %arg23[%c0_26, %c0_27] : memref<8x128xf32, #tpu.memory_space<vmem>>, vector<8x128xf32>
      %c0_28 = arith.constant 0 : index
      %c0_29 = arith.constant 0 : index
      %45 = vector.load %arg7[%c0_28, %c0_29] : memref<8x1xf32, #tpu.memory_space<vmem>>, vector<8x1xf32>
      %46 = vector.broadcast %45 : vector<8x1xf32> to vector<8x128xf32>
      %47 = arith.mulf %44, %46 : vector<8x128xf32>
      %c0_30 = arith.constant 0 : index
      %c0_31 = arith.constant 0 : index
      %48 = vector.load %arg6[%c0_30, %c0_31] : memref<8x128xf32, #tpu.memory_space<vmem>>, vector<8x128xf32>
      %49 = arith.addf %48, %47 : vector<8x128xf32>
      %c0_32 = arith.constant 0 : index
      %c0_33 = arith.constant 0 : index
      %50 = vector.load %arg14[%c0_32, %c0_33] : memref<1x128xf32, #tpu.memory_space<vmem>>, vector<1x128xf32>
      %c0_34 = arith.constant 0 : index
      %c0_35 = arith.constant 0 : index
      %51 = vector.load %arg15[%c0_34, %c0_35] : memref<1x128xf32, #tpu.memory_space<vmem>>, vector<1x128xf32>
      %52 = tpu.iota {dimensions = array<i32: 1>} : vector<8x128xi32>
      %cst_36 = arith.constant dense<0.000000e+00> : vector<8xf32>
      %53 = vector.multi_reduction <add>, %49, %cst_36 [1] : vector<8x128xf32> to vector<8xf32>
      %54 = vector.shape_cast %53 : vector<8xf32> to vector<8x1xf32>
      %cst_37 = arith.constant 3.200000e+01 : f32
      %55 = vector.broadcast %cst_37 : f32 to vector<8x1xf32>
      %56 = arith.divf %54, %55 : vector<8x1xf32>
      %c32_i32 = arith.constant 32 : i32
      %57 = vector.broadcast %c32_i32 : i32 to vector<8x128xi32>
      %58 = arith.cmpi slt, %52, %57 : vector<8x128xi32>
      %59 = vector.broadcast %56 : vector<8x1xf32> to vector<8x128xf32>
      %60 = arith.subf %49, %59 : vector<8x128xf32>
      %cst_38 = arith.constant 0.000000e+00 : f32
      %61 = vector.broadcast %cst_38 : f32 to vector<8x128xf32>
      %62 = arith.select %58, %60, %61 : vector<8x128xi1>, vector<8x128xf32>
      %63 = arith.mulf %62, %62 : vector<8x128xf32>
      %cst_39 = arith.constant dense<0.000000e+00> : vector<8xf32>
      %64 = vector.multi_reduction <add>, %63, %cst_39 [1] : vector<8x128xf32> to vector<8xf32>
      %65 = vector.shape_cast %64 : vector<8xf32> to vector<8x1xf32>
      %cst_40 = arith.constant 3.200000e+01 : f32
      %66 = vector.broadcast %cst_40 : f32 to vector<8x1xf32>
      %67 = arith.divf %65, %66 : vector<8x1xf32>
      %cst_41 = arith.constant 9.99999974E-6 : f32
      %68 = vector.broadcast %cst_41 : f32 to vector<8x1xf32>
      %69 = arith.addf %67, %68 : vector<8x1xf32>
      %70 = math.rsqrt %69 : vector<8x1xf32>
      %71 = vector.broadcast %70 : vector<8x1xf32> to vector<8x128xf32>
      %72 = arith.mulf %62, %71 : vector<8x128xf32>
      %73 = vector.broadcast %50 : vector<1x128xf32> to vector<8x128xf32>
      %74 = arith.mulf %72, %73 : vector<8x128xf32>
      %75 = vector.broadcast %51 : vector<1x128xf32> to vector<8x128xf32>
      %76 = arith.addf %74, %75 : vector<8x128xf32>
      %77 = arith.truncf %76 : vector<8x128xf32> to vector<8x128xbf16>
      %c0_42 = arith.constant 0 : index
      %c0_43 = arith.constant 0 : index
      %78 = vector.load %arg16[%c0_42, %c0_43] : memref<128x128xbf16, #tpu.memory_space<vmem>>, vector<128x128xbf16>
      %cst_44 = arith.constant dense<0.000000e+00> : vector<8x128xf32>
      %79 = tpu.matmul %77, %78, %cst_44 {dimension_numbers = #tpu.dot_dimension_numbers<[1], [0], [0], [1], [0, 0, 1, 1], [], []>} : vector<8x128xbf16>, vector<128x128xbf16>, vector<8x128xf32> -> vector<8x128xf32>
      %c0_45 = arith.constant 0 : index
      %c0_46 = arith.constant 0 : index
      %80 = vector.load %arg17[%c0_45, %c0_46] : memref<1x128xf32, #tpu.memory_space<vmem>>, vector<1x128xf32>
      %81 = vector.broadcast %80 : vector<1x128xf32> to vector<8x128xf32>
      %82 = arith.addf %79, %81 : vector<8x128xf32>
      %cst_47 = arith.constant 0.000000e+00 : f32
      %83 = vector.broadcast %cst_47 : f32 to vector<8x128xf32>
      %84 = arith.maximumf %82, %83 : vector<8x128xf32>
      %85 = arith.truncf %84 : vector<8x128xf32> to vector<8x128xbf16>
      %c0_48 = arith.constant 0 : index
      %c0_49 = arith.constant 0 : index
      %86 = vector.load %arg18[%c0_48, %c0_49] : memref<128x128xbf16, #tpu.memory_space<vmem>>, vector<128x128xbf16>
      %cst_50 = arith.constant dense<0.000000e+00> : vector<8x128xf32>
      %87 = tpu.matmul %85, %86, %cst_50 {dimension_numbers = #tpu.dot_dimension_numbers<[1], [0], [0], [1], [0, 0, 1, 1], [], []>} : vector<8x128xbf16>, vector<128x128xbf16>, vector<8x128xf32> -> vector<8x128xf32>
      %c0_51 = arith.constant 0 : index
      %c0_52 = arith.constant 0 : index
      %88 = vector.load %arg19[%c0_51, %c0_52] : memref<1x128xf32, #tpu.memory_space<vmem>>, vector<1x128xf32>
      %89 = vector.broadcast %88 : vector<1x128xf32> to vector<8x128xf32>
      %90 = arith.addf %87, %89 : vector<8x128xf32>
      %91 = arith.addf %76, %90 : vector<8x128xf32>
      %c0_53 = arith.constant 0 : index
      %c0_54 = arith.constant 0 : index
      %92 = vector.load %arg20[%c0_53, %c0_54] : memref<1x128xf32, #tpu.memory_space<vmem>>, vector<1x128xf32>
      %c0_55 = arith.constant 0 : index
      %c0_56 = arith.constant 0 : index
      %93 = vector.load %arg21[%c0_55, %c0_56] : memref<1x128xf32, #tpu.memory_space<vmem>>, vector<1x128xf32>
      %94 = tpu.iota {dimensions = array<i32: 1>} : vector<8x128xi32>
      %cst_57 = arith.constant dense<0.000000e+00> : vector<8xf32>
      %95 = vector.multi_reduction <add>, %91, %cst_57 [1] : vector<8x128xf32> to vector<8xf32>
      %96 = vector.shape_cast %95 : vector<8xf32> to vector<8x1xf32>
      %cst_58 = arith.constant 3.200000e+01 : f32
      %97 = vector.broadcast %cst_58 : f32 to vector<8x1xf32>
      %98 = arith.divf %96, %97 : vector<8x1xf32>
      %c32_i32_59 = arith.constant 32 : i32
      %99 = vector.broadcast %c32_i32_59 : i32 to vector<8x128xi32>
      %100 = arith.cmpi slt, %94, %99 : vector<8x128xi32>
      %101 = vector.broadcast %98 : vector<8x1xf32> to vector<8x128xf32>
      %102 = arith.subf %91, %101 : vector<8x128xf32>
      %cst_60 = arith.constant 0.000000e+00 : f32
      %103 = vector.broadcast %cst_60 : f32 to vector<8x128xf32>
      %104 = arith.select %100, %102, %103 : vector<8x128xi1>, vector<8x128xf32>
      %105 = arith.mulf %104, %104 : vector<8x128xf32>
      %cst_61 = arith.constant dense<0.000000e+00> : vector<8xf32>
      %106 = vector.multi_reduction <add>, %105, %cst_61 [1] : vector<8x128xf32> to vector<8xf32>
      %107 = vector.shape_cast %106 : vector<8xf32> to vector<8x1xf32>
      %cst_62 = arith.constant 3.200000e+01 : f32
      %108 = vector.broadcast %cst_62 : f32 to vector<8x1xf32>
      %109 = arith.divf %107, %108 : vector<8x1xf32>
      %cst_63 = arith.constant 9.99999974E-6 : f32
      %110 = vector.broadcast %cst_63 : f32 to vector<8x1xf32>
      %111 = arith.addf %109, %110 : vector<8x1xf32>
      %112 = math.rsqrt %111 : vector<8x1xf32>
      %113 = vector.broadcast %112 : vector<8x1xf32> to vector<8x128xf32>
      %114 = arith.mulf %104, %113 : vector<8x128xf32>
      %115 = vector.broadcast %92 : vector<1x128xf32> to vector<8x128xf32>
      %116 = arith.mulf %114, %115 : vector<8x128xf32>
      %117 = vector.broadcast %93 : vector<1x128xf32> to vector<8x128xf32>
      %118 = arith.addf %116, %117 : vector<8x128xf32>
      %c0_64 = arith.constant 0 : index
      %c0_65 = arith.constant 0 : index
      %119 = vector.load %arg22[%c0_64, %c0_65] : memref<8x128xf32, #tpu.memory_space<vmem>>, vector<8x128xf32>
      tpu.vector_store %arg22[%c0_64, %c0_65], %118 {strides = array<i32>} : memref<8x128xf32, #tpu.memory_space<vmem>>, vector<8x128xf32>,
    } else {
    }
    return
  }
  func.func @transform_0(%arg0: i32, %arg1: memref<1xi32, #tpu.memory_space<smem>>, %arg2: memref<1xi32, #tpu.memory_space<smem>>, %arg3: memref<1xi32, #tpu.memory_space<smem>>) -> (i32, i32) {
    %c0_i32 = arith.constant 0 : i32
    %c0_i32_0 = arith.constant 0 : i32
    return %c0_i32, %arg0 : i32, i32
  }
  func.func @transform_1(%arg0: i32, %arg1: memref<1xi32, #tpu.memory_space<smem>>, %arg2: memref<1xi32, #tpu.memory_space<smem>>, %arg3: memref<1xi32, #tpu.memory_space<smem>>) -> (i32, i32) {
    %c0_i32 = arith.constant 0 : i32
    %c0_i32_0 = arith.constant 0 : i32
    return %arg0, %c0_i32 : i32, i32
  }
  func.func @transform_2(%arg0: i32, %arg1: memref<1xi32, #tpu.memory_space<smem>>, %arg2: memref<1xi32, #tpu.memory_space<smem>>, %arg3: memref<1xi32, #tpu.memory_space<smem>>) -> (i32, i32) {
    %0 = arith.index_cast %arg0 : i32 to index
    %1 = memref.load %arg1[%0] : memref<1xi32, #tpu.memory_space<smem>>
    %c0_i32 = arith.constant 0 : i32
    %c0_i32_0 = arith.constant 0 : i32
    return %1, %c0_i32 : i32, i32
  }
  func.func @transform_3(%arg0: i32, %arg1: memref<1xi32, #tpu.memory_space<smem>>, %arg2: memref<1xi32, #tpu.memory_space<smem>>, %arg3: memref<1xi32, #tpu.memory_space<smem>>) -> (i32, i32) {
    %0 = arith.index_cast %arg0 : i32 to index
    %1 = memref.load %arg1[%0] : memref<1xi32, #tpu.memory_space<smem>>
    %c0_i32 = arith.constant 0 : i32
    %c0_i32_0 = arith.constant 0 : i32
    return %1, %c0_i32 : i32, i32
  }
  func.func @transform_4(%arg0: i32, %arg1: memref<1xi32, #tpu.memory_space<smem>>, %arg2: memref<1xi32, #tpu.memory_space<smem>>, %arg3: memref<1xi32, #tpu.memory_space<smem>>) -> (i32, i32) {
    %c0_i32 = arith.constant 0 : i32
    %c0_i32_0 = arith.constant 0 : i32
    %c0_i32_1 = arith.constant 0 : i32
    return %c0_i32, %c0_i32_0 : i32, i32
  }
  func.func @transform_5(%arg0: i32, %arg1: memref<1xi32, #tpu.memory_space<smem>>, %arg2: memref<1xi32, #tpu.memory_space<smem>>, %arg3: memref<1xi32, #tpu.memory_space<smem>>) -> (i32, i32) {
    %c0_i32 = arith.constant 0 : i32
    %c0_i32_0 = arith.constant 0 : i32
    %c0_i32_1 = arith.constant 0 : i32
    return %c0_i32, %c0_i32_0 : i32, i32
  }
  func.func @transform_6(%arg0: i32, %arg1: memref<1xi32, #tpu.memory_space<smem>>, %arg2: memref<1xi32, #tpu.memory_space<smem>>, %arg3: memref<1xi32, #tpu.memory_space<smem>>) -> (i32, i32) {
    %c0_i32 = arith.constant 0 : i32
    %c0_i32_0 = arith.constant 0 : i32
    %c0_i32_1 = arith.constant 0 : i32
    return %c0_i32, %c0_i32_0 : i32, i32
  }
  func.func @transform_7(%arg0: i32, %arg1: memref<1xi32, #tpu.memory_space<smem>>, %arg2: memref<1xi32, #tpu.memory_space<smem>>, %arg3: memref<1xi32, #tpu.memory_space<smem>>) -> (i32, i32) {
    %c0_i32 = arith.constant 0 : i32
    %c0_i32_0 = arith.constant 0 : i32
    %c0_i32_1 = arith.constant 0 : i32
    return %c0_i32, %c0_i32_0 : i32, i32
  }
  func.func @transform_8(%arg0: i32, %arg1: memref<1xi32, #tpu.memory_space<smem>>, %arg2: memref<1xi32, #tpu.memory_space<smem>>, %arg3: memref<1xi32, #tpu.memory_space<smem>>) -> (i32, i32) {
    %c0_i32 = arith.constant 0 : i32
    %c0_i32_0 = arith.constant 0 : i32
    %c0_i32_1 = arith.constant 0 : i32
    return %c0_i32, %c0_i32_0 : i32, i32
  }
  func.func @transform_9(%arg0: i32, %arg1: memref<1xi32, #tpu.memory_space<smem>>, %arg2: memref<1xi32, #tpu.memory_space<smem>>, %arg3: memref<1xi32, #tpu.memory_space<smem>>) -> (i32, i32) {
    %c0_i32 = arith.constant 0 : i32
    %c0_i32_0 = arith.constant 0 : i32
    %c0_i32_1 = arith.constant 0 : i32
    return %c0_i32, %c0_i32_0 : i32, i32
  }
  func.func @transform_10(%arg0: i32, %arg1: memref<1xi32, #tpu.memory_space<smem>>, %arg2: memref<1xi32, #tpu.memory_space<smem>>, %arg3: memref<1xi32, #tpu.memory_space<smem>>) -> (i32, i32) {
    %c0_i32 = arith.constant 0 : i32
    %c0_i32_0 = arith.constant 0 : i32
    %c0_i32_1 = arith.constant 0 : i32
    return %c0_i32, %c0_i32_0 : i32, i32
  }
  func.func @transform_11(%arg0: i32, %arg1: memref<1xi32, #tpu.memory_space<smem>>, %arg2: memref<1xi32, #tpu.memory_space<smem>>, %arg3: memref<1xi32, #tpu.memory_space<smem>>) -> (i32, i32) {
    %c0_i32 = arith.constant 0 : i32
    %c0_i32_0 = arith.constant 0 : i32
    %c0_i32_1 = arith.constant 0 : i32
    return %c0_i32, %c0_i32_0 : i32, i32
  }
  func.func @transform_12(%arg0: i32, %arg1: memref<1xi32, #tpu.memory_space<smem>>, %arg2: memref<1xi32, #tpu.memory_space<smem>>, %arg3: memref<1xi32, #tpu.memory_space<smem>>) -> (i32, i32) {
    %c0_i32 = arith.constant 0 : i32
    %c0_i32_0 = arith.constant 0 : i32
    %c0_i32_1 = arith.constant 0 : i32
    return %c0_i32, %c0_i32_0 : i32, i32
  }
  func.func @transform_13(%arg0: i32, %arg1: memref<1xi32, #tpu.memory_space<smem>>, %arg2: memref<1xi32, #tpu.memory_space<smem>>, %arg3: memref<1xi32, #tpu.memory_space<smem>>) -> (i32, i32) {
    %c0_i32 = arith.constant 0 : i32
    %c0_i32_0 = arith.constant 0 : i32
    %c0_i32_1 = arith.constant 0 : i32
    return %c0_i32, %c0_i32_0 : i32, i32
  }
  func.func @transform_14(%arg0: i32, %arg1: memref<1xi32, #tpu.memory_space<smem>>, %arg2: memref<1xi32, #tpu.memory_space<smem>>, %arg3: memref<1xi32, #tpu.memory_space<smem>>) -> (i32, i32) {
    %c0_i32 = arith.constant 0 : i32
    %c0_i32_0 = arith.constant 0 : i32
    %c0_i32_1 = arith.constant 0 : i32
    return %c0_i32, %c0_i32_0 : i32, i32
  }
  func.func @transform_15(%arg0: i32, %arg1: memref<1xi32, #tpu.memory_space<smem>>, %arg2: memref<1xi32, #tpu.memory_space<smem>>, %arg3: memref<1xi32, #tpu.memory_space<smem>>) -> (i32, i32) {
    %c0_i32 = arith.constant 0 : i32
    %c0_i32_0 = arith.constant 0 : i32
    %c0_i32_1 = arith.constant 0 : i32
    return %c0_i32, %c0_i32_0 : i32, i32
  }
  func.func @transform_16(%arg0: i32, %arg1: memref<1xi32, #tpu.memory_space<smem>>, %arg2: memref<1xi32, #tpu.memory_space<smem>>, %arg3: memref<1xi32, #tpu.memory_space<smem>>) -> (i32, i32) {
    %c0_i32 = arith.constant 0 : i32
    %c0_i32_0 = arith.constant 0 : i32
    %c0_i32_1 = arith.constant 0 : i32
    return %c0_i32, %c0_i32_0 : i32, i32
  }
  func.func @transform_17(%arg0: i32, %arg1: memref<1xi32, #tpu.memory_space<smem>>, %arg2: memref<1xi32, #tpu.memory_space<smem>>, %arg3: memref<1xi32, #tpu.memory_space<smem>>) -> (i32, i32) {
    %c0_i32 = arith.constant 0 : i32
    %c0_i32_0 = arith.constant 0 : i32
    %c0_i32_1 = arith.constant 0 : i32
    return %c0_i32, %c0_i32_0 : i32, i32
  }
  func.func @transform_18(%arg0: i32, %arg1: memref<1xi32, #tpu.memory_space<smem>>, %arg2: memref<1xi32, #tpu.memory_space<smem>>, %arg3: memref<1xi32, #tpu.memory_space<smem>>) -> (i32, i32) {
    %0 = arith.index_cast %arg0 : i32 to index
    %1 = memref.load %arg1[%0] : memref<1xi32, #tpu.memory_space<smem>>
    %c0_i32 = arith.constant 0 : i32
    %c0_i32_0 = arith.constant 0 : i32
    return %1, %c0_i32 : i32, i32
  }
}

</mosaic_0001>

<bundles_post_ra>
// kernel: tpu_custom_call.1
= control target key start
LH: loop header
LB: loop body
LE: loop exit
PB: predicated region body
PF: predicated region fallthrough
CT: control target
= control target key end

     0   :  { %s1693_s0 = inlined_call_operand.<no memory space> [shape: s32[1], index: 0, kind: input, shape index: {}]   ;;  %s1694_s1 = inlined_call_operand.<no memory space> [shape: s32[1], index: 1, kind: input, shape index: {}]   ;;  %s1695_s2 = inlined_call_operand.<no memory space> [shape: s32[1], index: 2, kind: input, shape index: {}]   ;;  %s1696_s3 = inlined_call_operand.vmem [shape: s32[1,128], index: 3, kind: input, shape index: {}]   ;;  %s1697_s4 = inlined_call_operand.hbm [shape: bf16[128,128], index: 4, kind: input, shape index: {}]   ;;  %s1698_s5 = inlined_call_operand.vmem [shape: f32[8,128], index: 5, kind: input, shape index: {}]   ;;  %s1699_s6 = inlined_call_operand.vmem [shape: f32[8,1], index: 6, kind: input, shape index: {}]   ;;  %s1700_s7 = inlined_call_operand.hbm [shape: bf16[128,128], index: 7, kind: input, shape index: {}]   ;;  %s1701_s8 = inlined_call_operand.vmem [shape: f32[1,128], index: 8, kind: input, shape index: {}]   ;;  %s1702_s9 = inlined_call_operand.hbm [shape: bf16[128,128], index: 9, kind: input, shape index: {}]   ;;  %s1703_s10 = inlined_call_operand.vmem [shape: f32[1,128], index: 10, kind: input, shape index: {}]   ;;  %s1704_s11 = inlined_call_operand.hbm [shape: bf16[128,128], index: 11, kind: input, shape index: {}]   ;;  %s1705_s12 = inlined_call_operand.vmem [shape: f32[1,128], index: 12, kind: input, shape index: {}]   ;;  %s1706_s13 = inlined_call_operand.vmem [shape: f32[1,128], index: 13, kind: input, shape index: {}]   ;;  %s1707_s14 = inlined_call_operand.vmem [shape: f32[1,128], index: 14, kind: input, shape index: {}]   ;;  %s1708_s15 = inlined_call_operand.hbm [shape: bf16[128,128], index: 15, kind: input, shape index: {}]   ;;  %s1709_s16 = inlined_call_operand.vmem [shape: f32[1,128], index: 16, kind: input, shape index: {}]   ;;  %s1710_s17 = inlined_call_operand.hbm [shape: bf16[128,128], index: 17, kind: input, shape index: {}]   ;;  %s1711_s18 = inlined_call_operand.vmem [shape: f32[1,128], index: 18, kind: input, shape index: {}]   ;;  %s1712_s19 = inlined_call_operand.vmem [shape: f32[1,128], index: 19, kind: input, shape index: {}]   ;;  %s1713_s20 = inlined_call_operand.vmem [shape: f32[1,128], index: 20, kind: input, shape index: {}]   ;;  %s1714_s21 = inlined_call_operand.hbm [shape: f32[8,128], index: 21, kind: output, shape index: {}]  }
   0x1   :  { %1715 = sst [smem:[#allocation24_spill]] %s1693_s0 }
   0x2   :  { %1716 = sst [smem:[#allocation25_spill]] %s1694_s1 }
   0x3   :  { %1717 = sst [smem:[#allocation26_spill]] %s1695_s2 }
   0x4   :  { %1718 = sst [smem:[#allocation27_spill]] %s1696_s3 }
   0x5   :  { %1719 = sst [smem:[#allocation28_spill]] %s1697_s4 }
   0x6   :  { %1720 = sst [smem:[#allocation29_spill]] %s1698_s5 }
   0x7   :  { %1721 = sst [smem:[#allocation30_spill]] %s1709_s16 }
   0x8   :  { %s1722_s26 = sld [smem:[#allocation24_spill]] }
   0x9   :  { %s1723_s16 = sld [smem:[#allocation26_spill]] }
   0xe   :  { %26 = sst [smem:[#allocation4]] %s1722_s26 }
   0xf   :  { %28 = sst [smem:[#allocation6]] %s1723_s16 }
  0x10   :  { %29 = vsyncpa [#allocation8], 0 }
  0x11   :  { %30 = vsyncpa [#allocation11], 0 }
  0x12   :  { %31 = vsyncpa [#allocation14], 0 }
  0x13   :  { %32 = vsyncpa [#allocation17], 0 }
  0x14   :  { %33 = vsyncpa [#allocation9], 0  ;;  %s69_s0 = sshll.u32 %s1700_s7, 4  ;;  %s1443_s4 = smov [#allocation10]   ;;  %s70_s0 = int_to_ptr.hbm [resolvable:$true] %s69_s0 }
  0x15   :  { %s71_s30 = sshll.u32 %s1443_s4, 4  ;;  %s99_s23 = sshll.u32 %s1704_s11, 4  ;;  %s72_s30 = int_to_ptr.vmem [resolvable:$true] %s71_s30  ;;  %s100_s23 = int_to_ptr.hbm [resolvable:$true] %s99_s23 }
  0x16   :  { %s1444_s1 = smov 64   ;;  %s1445_s24 = smov 4  }
  0x17   :  { %77 = dma.hbm_to_vmem [thread:$0]  %s70_s0, 1024, %s72_s30, [#allocation11], %s1444_s1, %s1444_s1, %s1445_s24  }
  0x18   :  { %s1446_s16 = smov [#allocation13]   ;;  %s1724_s7 = sld [smem:[#allocation28_spill]] }
  0x19   :  { %s101_s2 = sshll.u32 %s1446_s16, 4  ;;  %s84_s28 = sshll.u32 %s1702_s9, 4  ;;  %s102_s2 = int_to_ptr.vmem [resolvable:$true] %s101_s2  ;;  %s85_s28 = int_to_ptr.hbm [resolvable:$true] %s84_s28 }
  0x1a   :  { %107 = dma.hbm_to_vmem [thread:$0]  %s100_s23, 1024, %s102_s2, [#allocation14], %s1444_s1, %s1444_s1, %s1445_s24  }
  0x1b   :  { %s1447_s29 = smov [#allocation7]   ;;  %s1448_s0 = smov [#allocation12]  }
  0x1c   :  { %s42_s4 = sshll.u32 %s1447_s29, 4  ;;  %s86_s30 = sshll.u32 %s1448_s0, 4  ;;  %s43_s4 = int_to_ptr.vmem [resolvable:$true] %s42_s4  ;;  %s87_s30 = int_to_ptr.vmem [resolvable:$true] %s86_s30 }
  0x1d   :  { %s118_s16 = sshll.u32 %s1708_s15, 4  ;;  %s133_s2 = sshll.u32 %s1710_s17, 4  ;;  %s119_s16 = int_to_ptr.hbm [resolvable:$true] %s118_s16  ;;  %s134_s2 = int_to_ptr.hbm [resolvable:$true] %s133_s2 }
  0x1e   :  { %s40_s27 = sshll.u32 %s1724_s7, 4  ;;  %s1449_s25 = smov [#allocation15]   ;;  %s41_s27 = int_to_ptr.hbm [resolvable:$true] %s40_s27 }
  0x1f   :  { %48 = dma.hbm_to_vmem [thread:$0]  %s41_s27, 1024, %s43_s4, [#allocation8], %s1444_s1, %s1444_s1, %s1445_s24  }
  0x20   :  { %92 = dma.hbm_to_vmem [thread:$0]  %s85_s28, 1024, %s87_s30, [#allocation11], %s1444_s1, %s1444_s1, %s1445_s24  }
  0x21   :  { %s120_s26 = sshll.u32 %s1449_s25, 4  ;;  %s1450_s7 = smov [#allocation16]   ;;  %s121_s26 = int_to_ptr.vmem [resolvable:$true] %s120_s26 }
  0x22   :  { %126 = dma.hbm_to_vmem [thread:$0]  %s119_s16, 1024, %s121_s26, [#allocation14], %s1444_s1, %s1444_s1, %s1445_s24  }
  0x23   :  { %s135_s15 = sshll.u32 %s1450_s7, 4  ;;  %s136_s15 = int_to_ptr.vmem [resolvable:$true] %s135_s15 }
  0x24   :  { %141 = dma.hbm_to_vmem [thread:$0]  %s134_s2, 1024, %s136_s15, [#allocation17], %s1444_s1, %s1444_s1, %s1445_s24  }
  0x25   :  { %1433 = dma.done.wait [#allocation8], 1024  }
  0x26   :  { %1434 = vsyncadd [#allocation8], 4294966272 }
  0x27   :  { %1435 = dma.done.wait [#allocation11], 2048  }
  0x28   :  { %1436 = vsyncadd [#allocation11], 4294965248 }
  0x29   :  { %1437 = dma.done.wait [#allocation14], 2048  }
  0x2a   :  { %1438 = vsyncadd [#allocation14], 4294965248 }
  0x2b   :  { %1439 = dma.done.wait [#allocation17], 1024  }
  0x2c   :  { %1440 = vsyncadd [#allocation17], 4294966272  ;;  %s182_s17 = sld [smem:[#allocation4]] }
  0x2d   :  { %s1725_s28 = sld [smem:[#allocation29_spill]] }
  0x2e   :  { %s1726_s5 = sld [smem:[#allocation25_spill]] }
  0x32   :  { %p183_p0 = scmp.lt.s32.totalorder %s182_s17, 0 }
  0x34   :  { %s1730_s17 = smov (!%p183_p0, %s182_s17), 0  ;;  %p989_p1 = scmp.ne.s32.totalorder %s1726_s5, 1 }
  0x35   :  { %s987_s27 = sshll.u32 %s1730_s17, 3 }
  0x36   :  { %s1611_s29 = scalar_lea.vmem %s1725_s28, %s987_s27  ;;  %s1616_s1 = scalar_lea.vmem %s1699_s6, %s987_s27 }
  0x37   :  { %199 = sbr.rel (%p989_p1) target bundleno = 62 (0x3e), region = 101 }
  0x3c   :  { %v1451_v0 = vmov 0.0  }
  0x3d   :  { %200 = vst [vmem:[#allocation2] sm:$0xff] %v1451_v0 }
  0x3e PF:  { %v1202_v1 = vld [vmem:[#allocation10 + $0x38] sm:$0xff]  ;;  %v1201_v2 = vld [vmem:[#allocation10 + $0x30] sm:$0xff]  ;;  %v1200_v3 = vld [vmem:[#allocation10 + $0x28] sm:$0xff]  ;;  %s1727_s2 = sld [smem:[#allocation27_spill]] }
  0x3f   :  { %333 = vmatpush.bf16.msra.mxu0 %v1202_v1  ;;  %v1199_v4 = vld [vmem:[#allocation10 + $0x20] sm:$0xff]  ;;  %v1198_v5 = vld [vmem:[#allocation10 + $0x18] sm:$0xff]  ;;  %v1197_v6 = vld [vmem:[#allocation10 + $0x10] sm:$0xff]  ;;  %s696_s25 = sld [smem:[#allocation6]] }
  0x40   :  { %v1196_v7 = vld [vmem:[#allocation10 + $0x8] sm:$0xff]  ;;  %v1195_v8 = vld [vmem:[#allocation10] sm:$0xff]  ;;  %v1189_v11 = vld [vmem:[#allocation7 + $0x10] sm:$0xff] }
  0x41   :  { %v1187_v9 = vld [vmem:[#allocation7] sm:$0xff]  ;;  %v1188_v10 = vld [vmem:[#allocation7 + $0x8] sm:$0xff]  ;;  %v1190_v12 = vld [vmem:[#allocation7 + $0x18] sm:$0xff] }
  0x42   :  { %v1191_v13 = vld [vmem:[#allocation7 + $0x20] sm:$0xff]  ;;  %v1210_v14 = vld [vmem:[#allocation12 + $0x38] sm:$0xff]  ;;  %v1192_v15 = vld [vmem:[#allocation7 + $0x28] sm:$0xff] }
  0x43   :  { %334 = vmatpush.bf16.msra.mxu0 %v1201_v2  ;;  %474 = vmatpush.bf16.msra.mxu1 %v1210_v14  ;;  %v1209_v16 = vld [vmem:[#allocation12 + $0x30] sm:$0xff]  ;;  %v1208_v17 = vld [vmem:[#allocation12 + $0x28] sm:$0xff]  ;;  %v1207_v18 = vld [vmem:[#allocation12 + $0x20] sm:$0xff] }
  0x44   :  { %v1206_v19 = vld [vmem:[#allocation12 + $0x18] sm:$0xff]  ;;  %v1193_v20 = vld [vmem:[#allocation7 + $0x30] sm:$0xff]  ;;  %v1204_v22 = vld [vmem:[#allocation12 + $0x8] sm:$0xff] }
  0x45   :  { %v1205_v21 = vld [vmem:[#allocation12 + $0x10] sm:$0xff]  ;;  %v1203_v23 = vld [vmem:[#allocation12] sm:$0xff]  ;;  %v1194_v24 = vld [vmem:[#allocation7 + $0x38] sm:$0xff]  ;;  %p1121_p2 = scmp.ne.s32.totalorder %s696_s25, 1 }
  0x46   :  { %v1624_v26 = vld [vmem:[%s1701_s8] ss:$0 sm:$0xff]  ;;  %s1728_s3 = sld [smem:[#allocation30_spill]] (!%p1121_p2) }
  0x47   :  { %335 = vmatpush.bf16.msra.mxu0 %v1200_v3  ;;  %475 = vmatpush.bf16.msra.mxu1 %v1209_v16  ;;  %v1218_v1 = vld [vmem:[#allocation13 + $0x38] sm:$0xff]  ;;  %v1213_v16 = vld [vmem:[#allocation13 + $0x10] sm:$0xff] }
  0x48   :  { %615 = vmatpush.bf16.msra.mxu2 %v1218_v1 }
  0x4b   :  { %336 = vmatpush.bf16.msra.mxu0 %v1199_v4  ;;  %476 = vmatpush.bf16.msra.mxu1 %v1208_v17 }
  0x4f   :  { %337 = vmatpush.bf16.msra.mxu0 %v1198_v5  ;;  %477 = vmatpush.bf16.msra.mxu1 %v1207_v18  ;;  %v1217_v5 = vld [vmem:[#allocation13 + $0x30] sm:$0xff]  ;;  %v1212_v18 = vld [vmem:[#allocation13 + $0x8] sm:$0xff] }
  0x50   :  { %616 = vmatpush.bf16.msra.mxu2 %v1217_v5 }
  0x53   :  { %338 = vmatpush.bf16.msra.mxu0 %v1197_v6  ;;  %478 = vmatpush.bf16.msra.mxu1 %v1206_v19  ;;  %v1211_v19 = vld [vmem:[#allocation13] sm:$0xff] }
  0x57   :  { %339 = vmatpush.bf16.msra.mxu0 %v1196_v7  ;;  %479 = vmatpush.bf16.msra.mxu1 %v1205_v21  ;;  %v1216_v7 = vld [vmem:[#allocation13 + $0x28] sm:$0xff] }
  0x58   :  { %617 = vmatpush.bf16.msra.mxu2 %v1216_v7 }
  0x5b   :  { %340 = vmatpush.bf16.msra.mxu0 %v1195_v8  ;;  %480 = vmatpush.bf16.msra.mxu1 %v1204_v22  ;;  %v1215_v8 = vld [vmem:[#allocation13 + $0x20] sm:$0xff] }
  0x5c   :  { %618 = vmatpush.bf16.msra.mxu2 %v1215_v8 }
  0x5e   :  { %341 = vmatmul.bf16.vlgmr.msra.gmra.mxu0 %v1187_v9 }
  0x5f   :  { %481 = vmatpush.bf16.msra.mxu1 %v1203_v23 }
  0x6e   :  { %346 = vmatmul.bf16.gmra.mxu0 %v1188_v10 }
  0x7e   :  { %351 = vmatmul.bf16.gmra.mxu0 %v1189_v11 }
  0x8e   :  { %356 = vmatmul.bf16.gmra.mxu0 %v1190_v12  ;;  %v1214_v12 = vld [vmem:[#allocation13 + $0x18] sm:$0xff] }
  0x8f   :  { %619 = vmatpush.bf16.msra.mxu2 %v1214_v12 }
  0x93   :  { %620 = vmatpush.bf16.msra.mxu2 %v1213_v16 }
  0x97   :  { %621 = vmatpush.bf16.msra.mxu2 %v1212_v18 }
  0x9b   :  { %622 = vmatpush.bf16.msra.mxu2 %v1211_v19 }
  0x9e   :  { %361 = vmatmul.bf16.gmra.mxu0 %v1191_v13 }
  0xae   :  { %366 = vmatmul.bf16.gmra.mxu0 %v1192_v15 }
  0xbe   :  { %371 = vmatmul.bf16.gmra.mxu0 %v1193_v20 }
  0xce   :  { %376 = vmatmul.bf16.gmra.mxu0 %v1194_v24 }
  0xdb   :  { %v342_v25 = vpop.f32.mrf.mxu0 }
  0xdc   :  { %v343_v27 = vadd.f32 %v1624_v26, %v342_v25 }
  0xde   :  { %v382_v30 = vmax.f32 %v343_v27, 0.0 }
  0xe3   :  { %v344_v28 = vpop.f32.mrf.mxu0 }
  0xe4   :  { %v345_v29 = vadd.f32 %v1624_v26, %v344_v28  ;;  %v1249_v28 = vld [vmem:[%s1703_s10] ss:$0 sm:$0xff] }
  0xe6   :  { %v383_v31 = vmax.f32 %v345_v29, 0.0 }
  0xe8   :  { %v398_v32 = vpack.c.bf16 %v383_v31, %v382_v30 }
  0xea   :  { %482 = vmatmul.bf16.vlgmr.msra.gmra.mxu1 %v398_v32 }
  0xeb   :  { %v347_v33 = vpop.f32.mrf.mxu0 }
  0xec   :  { %v348_v34 = vadd.f32 %v1624_v26, %v347_v33 }
  0xee   :  { %v384_v37 = vmax.f32 %v348_v34, 0.0 }
  0xf3   :  { %v349_v35 = vpop.f32.mrf.mxu0 }
  0xf4   :  { %v350_v36 = vadd.f32 %v1624_v26, %v349_v35 }
  0xf6   :  { %v385_v38 = vmax.f32 %v350_v36, 0.0 }
  0xf8   :  { %v399_v39 = vpack.c.bf16 %v385_v38, %v384_v37 }
  0xfa   :  { %487 = vmatmul.bf16.gmra.mxu1 %v399_v39 }
  0xfb   :  { %v352_v40 = vpop.f32.mrf.mxu0 }
  0xfc   :  { %v353_v41 = vadd.f32 %v1624_v26, %v352_v40 }
  0xfe   :  { %v386_v44 = vmax.f32 %v353_v41, 0.0 }
 0x103   :  { %v354_v42 = vpop.f32.mrf.mxu0 }
 0x104   :  { %v355_v43 = vadd.f32 %v1624_v26, %v354_v42 }
 0x106   :  { %v387_v45 = vmax.f32 %v355_v43, 0.0 }
 0x108   :  { %v400_v46 = vpack.c.bf16 %v387_v45, %v386_v44 }
 0x10a   :  { %492 = vmatmul.bf16.gmra.mxu1 %v400_v46 }
 0x10b   :  { %v357_v47 = vpop.f32.mrf.mxu0 }
 0x10c   :  { %v358_v48 = vadd.f32 %v1624_v26, %v357_v47 }
 0x10e   :  { %v388_v51 = vmax.f32 %v358_v48, 0.0 }
 0x113   :  { %v359_v49 = vpop.f32.mrf.mxu0 }
 0x114   :  { %v360_v50 = vadd.f32 %v1624_v26, %v359_v49 }
 0x116   :  { %v389_v52 = vmax.f32 %v360_v50, 0.0 }
 0x118   :  { %v401_v53 = vpack.c.bf16 %v389_v52, %v388_v51 }
 0x11a   :  { %497 = vmatmul.bf16.gmra.mxu1 %v401_v53 }
 0x11b   :  { %v362_v54 = vpop.f32.mrf.mxu0 }
 0x11c   :  { %v363_v55 = vadd.f32 %v1624_v26, %v362_v54 }
 0x11e   :  { %v390_v58 = vmax.f32 %v363_v55, 0.0 }
 0x123   :  { %v364_v56 = vpop.f32.mrf.mxu0 }
 0x124   :  { %v365_v57 = vadd.f32 %v1624_v26, %v364_v56 }
 0x126   :  { %v391_v59 = vmax.f32 %v365_v57, 0.0 }
 0x128   :  { %v402_v60 = vpack.c.bf16 %v391_v59, %v390_v58 }
 0x12a   :  { %502 = vmatmul.bf16.gmra.mxu1 %v402_v60 }
 0x12b   :  { %v367_v61 = vpop.f32.mrf.mxu0 }
 0x12c   :  { %v368_v62 = vadd.f32 %v1624_v26, %v367_v61 }
 0x12e   :  { %v392_v2 = vmax.f32 %v368_v62, 0.0 }
 0x133   :  { %v369_v63 = vpop.f32.mrf.mxu0 }
 0x134   :  { %v370_v0 = vadd.f32 %v1624_v26, %v369_v63 }
 0x136   :  { %v393_v3 = vmax.f32 %v370_v0, 0.0 }
 0x138   :  { %v403_v4 = vpack.c.bf16 %v393_v3, %v392_v2 }
 0x13a   :  { %507 = vmatmul.bf16.gmra.mxu1 %v403_v4 }
 0x13b   :  { %v372_v6 = vpop.f32.mrf.mxu0 }
 0x13c   :  { %v373_v9 = vadd.f32 %v1624_v26, %v372_v6 }
 0x13e   :  { %v394_v13 = vmax.f32 %v373_v9, 0.0 }
 0x143   :  { %v374_v10 = vpop.f32.mrf.mxu0 }
 0x144   :  { %v375_v11 = vadd.f32 %v1624_v26, %v374_v10 }
 0x146   :  { %v395_v14 = vmax.f32 %v375_v11, 0.0 }
 0x148   :  { %v404_v15 = vpack.c.bf16 %v395_v14, %v394_v13 }
 0x14a   :  { %512 = vmatmul.bf16.gmra.mxu1 %v404_v15 }
 0x14b   :  { %v377_v17 = vpop.f32.mrf.mxu0 }
 0x14c   :  { %v378_v20 = vadd.f32 %v1624_v26, %v377_v17 }
 0x14e   :  { %v396_v23 = vmax.f32 %v378_v20, 0.0  ;;  %v1250_v20 = vld [vmem:[%s1705_s12] ss:$0 sm:$0xff] }
 0x153   :  { %v379_v21 = vpop.f32.mrf.mxu0 }
 0x154   :  { %v380_v22 = vadd.f32 %v1624_v26, %v379_v21 }
 0x156   :  { %v397_v24 = vmax.f32 %v380_v22, 0.0 }
 0x158   :  { %v405_v25 = vpack.c.bf16 %v397_v24, %v396_v23 }
 0x15a   :  { %517 = vmatmul.bf16.gmra.mxu1 %v405_v25 }
 0x167   :  { %v483_v27 = vpop.f32.mrf.mxu1 }
 0x168   :  { %v484_v29 = vadd.f32 %v1249_v28, %v483_v27 }
 0x16a   :  { %v523_v32 = vmax.f32 %v484_v29, 0.0 }
 0x16f   :  { %v485_v30 = vpop.f32.mrf.mxu1 }
 0x170   :  { %v486_v31 = vadd.f32 %v1249_v28, %v485_v30 }
 0x172   :  { %v524_v33 = vmax.f32 %v486_v31, 0.0 }
 0x174   :  { %v539_v34 = vpack.c.bf16 %v524_v33, %v523_v32 }
 0x176   :  { %623 = vmatmul.bf16.vlgmr.msra.gmra.mxu2 %v539_v34 }
 0x177   :  { %v488_v35 = vpop.f32.mrf.mxu1 }
 0x178   :  { %v489_v36 = vadd.f32 %v1249_v28, %v488_v35 }
 0x17a   :  { %v525_v38 = vmax.f32 %v489_v36, 0.0 }
 0x17f   :  { %v490_v37 = vpop.f32.mrf.mxu1 }
 0x180   :  { %v491_v26 = vadd.f32 %v1249_v28, %v490_v37 }
 0x182   :  { %v526_v39 = vmax.f32 %v491_v26, 0.0 }
 0x184   :  { %v540_v40 = vpack.c.bf16 %v526_v39, %v525_v38 }
 0x186   :  { %628 = vmatmul.bf16.gmra.mxu2 %v540_v40 }
 0x187   :  { %v493_v41 = vpop.f32.mrf.mxu1 }
 0x188   :  { %v494_v42 = vadd.f32 %v1249_v28, %v493_v41 }
 0x18a   :  { %v527_v45 = vmax.f32 %v494_v42, 0.0 }
 0x18f   :  { %v495_v43 = vpop.f32.mrf.mxu1 }
 0x190   :  { %v496_v44 = vadd.f32 %v1249_v28, %v495_v43 }
 0x192   :  { %v528_v46 = vmax.f32 %v496_v44, 0.0 }
 0x194   :  { %v541_v47 = vpack.c.bf16 %v528_v46, %v527_v45 }
 0x196   :  { %633 = vmatmul.bf16.gmra.mxu2 %v541_v47 }
 0x197   :  { %v498_v48 = vpop.f32.mrf.mxu1 }
 0x198   :  { %v499_v49 = vadd.f32 %v1249_v28, %v498_v48 }
 0x19a   :  { %v529_v52 = vmax.f32 %v499_v49, 0.0 }
 0x19f   :  { %v500_v50 = vpop.f32.mrf.mxu1 }
 0x1a0   :  { %v501_v51 = vadd.f32 %v1249_v28, %v500_v50 }
 0x1a2   :  { %v530_v53 = vmax.f32 %v501_v51, 0.0 }
 0x1a4   :  { %v542_v54 = vpack.c.bf16 %v530_v53, %v529_v52 }
 0x1a6   :  { %638 = vmatmul.bf16.gmra.mxu2 %v542_v54 }
 0x1a7   :  { %v503_v55 = vpop.f32.mrf.mxu1 }
 0x1a8   :  { %v504_v56 = vadd.f32 %v1249_v28, %v503_v55 }
 0x1aa   :  { %v531_v59 = vmax.f32 %v504_v56, 0.0 }
 0x1af   :  { %v505_v57 = vpop.f32.mrf.mxu1 }
 0x1b0   :  { %v506_v58 = vadd.f32 %v1249_v28, %v505_v57 }
 0x1b2   :  { %v532_v60 = vmax.f32 %v506_v58, 0.0 }
 0x1b4   :  { %v543_v61 = vpack.c.bf16 %v532_v60, %v531_v59  ;;  %v665_v60 = vlaneseq }
 0x1b6   :  { %643 = vmatmul.bf16.gmra.mxu2 %v543_v61  ;;  %v666_v61 = vshrl.u32 %v665_v60, 7 }
 0x1b7   :  { %v508_v62 = vpop.f32.mrf.mxu1 }
 0x1b8   :  { %v509_v63 = vadd.f32 %v1249_v28, %v508_v62  ;;  %v1251_v62 = vld [vmem:[%s1727_s2] ss:$0 sm:$0xff] }
 0x1b9   :  { %vm668_vm0 = vcmp.eq.s32.totalorder %v666_v61, %v1251_v62 }
 0x1ba   :  { %v533_v2 = vmax.f32 %v509_v63, 0.0  ;;  %vm1119_vm1 = vmpackc.low %vm668_vm0, %vm668_vm0  ;;  %v1452_v63 = vmov 1.0|1.0  }
 0x1bf   :  { %v510_v0 = vpop.f32.mrf.mxu1 }
 0x1c0   :  { %v511_v1 = vadd.f32 %v1249_v28, %v510_v0  ;;  %v672_v0 = vld [vmem:[#allocation2] sm:$0xff] }
 0x1c2   :  { %v534_v3 = vmax.f32 %v511_v1, 0.0 }
 0x1c4   :  { %v544_v4 = vpack.c.bf16 %v534_v3, %v533_v2 }
 0x1c6   :  { %648 = vmatmul.bf16.gmra.mxu2 %v544_v4 }
 0x1c7   :  { %v513_v5 = vpop.f32.mrf.mxu1 }
 0x1c8   :  { %v514_v6 = vadd.f32 %v1249_v28, %v513_v5 }
 0x1ca   :  { %v535_v9 = vmax.f32 %v514_v6, 0.0 }
 0x1cf   :  { %v515_v7 = vpop.f32.mrf.mxu1 }
 0x1d0   :  { %v516_v8 = vadd.f32 %v1249_v28, %v515_v7 }
 0x1d2   :  { %v536_v10 = vmax.f32 %v516_v8, 0.0 }
 0x1d4   :  { %v545_v11 = vpack.c.bf16 %v536_v10, %v535_v9 }
 0x1d6   :  { %653 = vmatmul.bf16.gmra.mxu2 %v545_v11 }
 0x1d7   :  { %v518_v12 = vpop.f32.mrf.mxu1 }
 0x1d8   :  { %v519_v13 = vadd.f32 %v1249_v28, %v518_v12 }
 0x1da   :  { %v537_v16 = vmax.f32 %v519_v13, 0.0 }
 0x1df   :  { %v520_v14 = vpop.f32.mrf.mxu1 }
 0x1e0   :  { %v521_v15 = vadd.f32 %v1249_v28, %v520_v14 }
 0x1e2   :  { %v538_v17 = vmax.f32 %v521_v15, 0.0 }
 0x1e4   :  { %v546_v18 = vpack.c.bf16 %v538_v17, %v537_v16 }
 0x1e6   :  { %658 = vmatmul.bf16.gmra.mxu2 %v546_v18 }
 0x1f9   :  { %v624_v19 = vpop.f32.mrf.mxu2 }
 0x1fa   :  { %v625_v22 = vadd.f32 %v1250_v20, %v624_v19 }
 0x201   :  { %v626_v21 = vpop.f32.mrf.mxu2 }
 0x202   :  { %v627_v23 = vadd.f32 %v1250_v20, %v626_v21 }
 0x204   :  { %v673_v24 = vpack.c.bf16 %v627_v23, %v625_v22 }
 0x209   :  { %v629_v25 = vpop.f32.mrf.mxu2 }
 0x20a   :  { %v630_v29 = vadd.f32 %v1250_v20, %v629_v25 }
 0x211   :  { %v631_v27 = vpop.f32.mrf.mxu2 }
 0x212   :  { %v632_v30 = vadd.f32 %v1250_v20, %v631_v27 }
 0x214   :  { %v674_v31 = vpack.c.bf16 %v632_v30, %v630_v29 }
 0x219   :  { %v634_v32 = vpop.f32.mrf.mxu2 }
 0x21a   :  { %v635_v33 = vadd.f32 %v1250_v20, %v634_v32 }
 0x221   :  { %v636_v28 = vpop.f32.mrf.mxu2 }
 0x222   :  { %v637_v34 = vadd.f32 %v1250_v20, %v636_v28 }
 0x224   :  { %v675_v35 = vpack.c.bf16 %v637_v34, %v635_v33 }
 0x229   :  { %v639_v36 = vpop.f32.mrf.mxu2 }
 0x22a   :  { %v640_v26 = vadd.f32 %v1250_v20, %v639_v36 }
 0x231   :  { %v641_v37 = vpop.f32.mrf.mxu2 }
 0x232   :  { %v642_v38 = vadd.f32 %v1250_v20, %v641_v37 }
 0x234   :  { %v676_v39 = vpack.c.bf16 %v642_v38, %v640_v26 }
 0x239   :  { %v644_v40 = vpop.f32.mrf.mxu2 }
 0x23a   :  { %v645_v58 = vadd.f32 %v1250_v20, %v644_v40 }
 0x241   :  { %v646_v41 = vpop.f32.mrf.mxu2 }
 0x242   :  { %v647_v56 = vadd.f32 %v1250_v20, %v646_v41 }
 0x244   :  { %v677_v59 = vpack.c.bf16 %v647_v56, %v645_v58 }
 0x249   :  { %v649_v42 = vpop.f32.mrf.mxu2 }
 0x24a   :  { %v650_v55 = vadd.f32 %v1250_v20, %v649_v42 }
 0x251   :  { %v651_v43 = vpop.f32.mrf.mxu2 }
 0x252   :  { %v652_v53 = vadd.f32 %v1250_v20, %v651_v43 }
 0x254   :  { %v678_v57 = vpack.c.bf16 %v652_v53, %v650_v55 }
 0x259   :  { %v654_v44 = vpop.f32.mrf.mxu2 }
 0x25a   :  { %v655_v52 = vadd.f32 %v1250_v20, %v654_v44 }
 0x261   :  { %v656_v45 = vpop.f32.mrf.mxu2 }
 0x262   :  { %v657_v50 = vadd.f32 %v1250_v20, %v656_v45 }
 0x264   :  { %v679_v54 = vpack.c.bf16 %v657_v50, %v655_v52 }
 0x269   :  { %v659_v46 = vpop.f32.mrf.mxu2 }
 0x26a   :  { %v660_v48 = vadd.f32 %v1250_v20, %v659_v46 }
 0x271   :  { %v661_v47 = vpop.f32.mrf.mxu2 }
 0x272   :  { %v662_v49 = vadd.f32 %v1250_v20, %v661_v47 }
 0x274   :  { %v680_v51 = vpack.c.bf16 %v662_v49, %v660_v48 }
 0x276   :  { %681 = vmatpush.bf16.msra.mxu3 %v680_v51 }
 0x27a   :  { %682 = vmatpush.bf16.msra.mxu3 %v679_v54 }
 0x27e   :  { %683 = vmatpush.bf16.msra.mxu3 %v678_v57 }
 0x282   :  { %684 = vmatpush.bf16.msra.mxu3 %v677_v59 }
 0x286   :  { %685 = vmatpush.bf16.msra.mxu3 %v676_v39 }
 0x28a   :  { %686 = vmatpush.bf16.msra.mxu3 %v675_v35 }
 0x28e   :  { %687 = vmatpush.bf16.msra.mxu3 %v674_v31 }
 0x292   :  { %688 = vmatpush.bf16.msra.mxu3 %v673_v24 }
 0x295   :  { %1120 = vmatmul.msk.bf16.vlgmr.msra.gmra.mxu3 %vm1119_vm1, %v1452_v63 }
 0x318   :  { %v690_v1 = vpop.f32.mrf.mxu3 }
 0x319   :  { %v694_v2 = vadd.f32 %v690_v1, %v672_v0 }
 0x31b   :  { %695 = vst [vmem:[#allocation2] sm:$0xff] %v694_v2 }
 0x31c   :  { %700 = sbr.rel (%p1121_p2) target bundleno = 1721 (0x6b9), region = 105 }
 0x320   :  { %v692_v3 = vpop.f32.mrf.mxu3 }
 0x321   :  { %v702_v4 = vld [vmem:[%s1616_s1] sm:$0xff]  ;;  %v1453_v5 = vmov 0   ;;  %v1454_v11 = vmov 32.0   ;;  %v1655_v19 = vand.u32 127, %v665_v60  ;;  %v1225_v25 = vld [vmem:[#allocation15 + $0x30] sm:$0xff]  ;;  %v1224_v27 = vld [vmem:[#allocation15 + $0x28] sm:$0xff] }
 0x322   :  { %1252 = vset.pattern.permute.xlu0 %v1453_v5  ;;  %v701_v6 = vld [vmem:[#allocation2] sm:$0xff]  ;;  %1259 = vrcp.f32 %v1454_v11  ;;  %v1223_v29 = vld [vmem:[#allocation15 + $0x20] sm:$0xff]  ;;  %v1221_v31 = vld [vmem:[#allocation15 + $0x10] sm:$0xff] }
 0x323   :  { %705 = vperm.xlu0 %1252, %v702_v4   ;;  %v709_v8 = vld [vmem:[%s1611_s29] sm:$0xff]  ;;  %vm725_vm3 = vcmp.lt.s32.totalorder %v1655_v19, 32  ;;  %v1220_v32 = vld [vmem:[#allocation15 + $0x8] sm:$0xff]  ;;  %v1219_v28 = vld [vmem:[#allocation15] sm:$0xff] }
 0x324   :  { %v1226_v12 = vld [vmem:[#allocation15 + $0x38] sm:$0xff]  ;;  %v1233_v36 = vld [vmem:[#allocation16 + $0x30] sm:$0xff]  ;;  %v1232_v26 = vld [vmem:[#allocation16 + $0x28] sm:$0xff] }
 0x325   :  { %821 = vmatpush.bf16.msra.mxu0 %v1226_v12  ;;  %v1222_v30 = vld [vmem:[#allocation15 + $0x18] sm:$0xff]  ;;  %v1231_v38 = vld [vmem:[#allocation16 + $0x20] sm:$0xff]  ;;  %v1229_v44 = vld [vmem:[#allocation16 + $0x10] sm:$0xff] }
 0x326   :  { %v1234_v33 = vld [vmem:[#allocation16 + $0x38] sm:$0xff]  ;;  %v1228_v54 = vld [vmem:[#allocation16 + $0x8] sm:$0xff]  ;;  %v1227_v55 = vld [vmem:[#allocation16] sm:$0xff] }
 0x327   :  { %904 = vmatpush.bf16.msra.mxu1 %v1234_v33  ;;  %v1230_v41 = vld [vmem:[#allocation16 + $0x18] sm:$0xff] }
 0x328   :  { %v1260_v13 = vpop.eup %1259  ;;  %v1253_v47 = vld [vmem:[%s1706_s13] ss:$0 sm:$0xff] }
 0x329   :  { %v718_v14 = vmul.f32 32.0, %v1260_v13  ;;  %vm722_vm2 = vweird.f32 %v1260_v13  ;;  %822 = vmatpush.bf16.msra.mxu0 %v1225_v25  ;;  %v1254_v50 = vld [vmem:[%s1707_s14] ss:$0 sm:$0xff] }
 0x32a   :  { %v1255_v56 = vld [vmem:[%s1728_s3] ss:$0 sm:$0xff] }
 0x32b   :  { %v719_v15 = vsub.f32 1.0, %v718_v14  ;;  %905 = vmatpush.bf16.msra.mxu1 %v1233_v36  ;;  %v1256_v62 = vld [vmem:[%s1711_s18] ss:$0 sm:$0xff] }
 0x32d   :  { %v720_v16 = vmul.f32 %v1260_v13, %v719_v15  ;;  %823 = vmatpush.bf16.msra.mxu0 %v1224_v27 }
 0x32f   :  { %v721_v17 = vadd.f32 %v1260_v13, %v720_v16  ;;  %906 = vmatpush.bf16.msra.mxu1 %v1232_v26 }
 0x331   :  { %v1653_v18 = vsel %vm722_vm2, %v1260_v13, %v721_v17  ;;  %824 = vmatpush.bf16.msra.mxu0 %v1223_v29  ;;  %v1257_v17 = vld [vmem:[%s1712_s19] ss:$0 sm:$0xff] }
 0x333   :  { %907 = vmatpush.bf16.msra.mxu1 %v1231_v38 }
 0x335   :  { %825 = vmatpush.bf16.msra.mxu0 %v1222_v30 }
 0x337   :  { %908 = vmatpush.bf16.msra.mxu1 %v1230_v41 }
 0x339   :  { %826 = vmatpush.bf16.msra.mxu0 %v1221_v31 }
 0x33b   :  { %909 = vmatpush.bf16.msra.mxu1 %v1229_v44 }
 0x33d   :  { %827 = vmatpush.bf16.msra.mxu0 %v1220_v32 }
 0x33f   :  { %910 = vmatpush.bf16.msra.mxu1 %v1228_v54 }
 0x341   :  { %828 = vmatpush.bf16.msra.mxu0 %v1219_v28 }
 0x343   :  { %911 = vmatpush.bf16.msra.mxu1 %v1227_v55 }
 0x395   :  { %v706_v7 = vpop.permute.xlu0 %705 }
 0x396   :  { %v708_v9 = vmul.f32 %v706_v7, %v701_v6 }
 0x398   :  { %v710_v10 = vadd.f32 %v709_v8, %v708_v9 }
 0x39a   :  { %715 = vadd.xlane.f32.xlu0 %v710_v10 }
 0x40d   :  { %v716_v20 = vpop.xlane.xlu0 %715 }
 0x40e   :  { %v724_v21 = vmul.f32 %v1653_v18, %v716_v20 }
 0x410   :  { %v726_v22 = vsub.f32 %v710_v10, %v724_v21 }
 0x412   :  { %v727_v23 = vsel %vm725_vm3, %v726_v22, 0.0 }
 0x413   :  { %v728_v24 = vmul.f32 %v727_v23, %v727_v23 }
 0x415   :  { %729 = vadd.xlane.f32.xlu1 %v728_v24 }
 0x488   :  { %v730_v34 = vpop.xlane.xlu1 %729 }
 0x489   :  { %v731_v35 = vmul.f32 %v730_v34, %v1653_v18 }
 0x48b   :  { %v732_v37 = vadd.f32 1e-05, %v731_v35 }
 0x48d   :  { %1261 = vrsqrt.f32 %v732_v37  ;;  %vm739_vm5 = vweird.f32 %v732_v37 }
 0x493   :  { %v1262_v39 = vpop.eup %1261 }
 0x494   :  { %v734_v40 = vmul.f32 %v1262_v39, %v732_v37  ;;  %vm740_vm4 = vweird.f32 %v1262_v39 }
 0x495   :  { %vm741_vm6 = vmor %vm739_vm5, %vm740_vm4 }
 0x496   :  { %v735_v42 = vmul.f32 %v1262_v39, %v734_v40 }
 0x498   :  { %v736_v43 = vmul.f32 0.5, %v735_v42 }
 0x49a   :  { %v737_v45 = vsub.f32 1.5, %v736_v43 }
 0x49c   :  { %v738_v46 = vmul.f32 %v1262_v39, %v737_v45 }
 0x49e   :  { %v742_v48 = vsel %vm741_vm6, %v1262_v39, %v738_v46 }
 0x49f   :  { %v743_v49 = vmul.f32 %v742_v48, %v727_v23 }
 0x4a1   :  { %v747_v51 = vmul.f32 %v1253_v47, %v743_v49 }
 0x4a3   :  { %v751_v52 = vadd.f32 %v1254_v50, %v747_v51 }
 0x4a5   :  { %v752_v53 = vpack.c.bf16 %v751_v52, %v751_v52 }
 0x4a7   :  { %829 = vmatmul.bf16.vlgmr.msra.gmra.mxu0 %v752_v53 }
 0x524   :  { %v830_v57 = vpop.f32.mrf.mxu0 }
 0x525   :  { %v831_v58 = vadd.f32 %v1255_v56, %v830_v57 }
 0x527   :  { %v834_v59 = vmax.f32 %v831_v58, 0.0 }
 0x529   :  { %v835_v60 = vpack.c.bf16 %v834_v59, %v834_v59 }
 0x52b   :  { %912 = vmatmul.bf16.vlgmr.msra.gmra.mxu1 %v835_v60 }
 0x52c   :  { %v832_v61 = vpop.f32.mrf.mxu0 }
 0x5a8   :  { %v913_v63 = vpop.f32.mrf.mxu1 }
 0x5a9   :  { %v914_v0 = vadd.f32 %v1256_v62, %v913_v63 }
 0x5ab   :  { %v917_v1 = vadd.f32 %v914_v0, %v751_v52 }
 0x5ad   :  { %920 = vadd.xlane.f32.xlu1 %v917_v1 }
 0x5b0   :  { %v915_v2 = vpop.f32.mrf.mxu1 }
 0x620   :  { %v921_v3 = vpop.xlane.xlu1 %920 }
 0x621   :  { %v922_v4 = vmul.f32 %v921_v3, %v1653_v18 }
 0x623   :  { %v923_v5 = vsub.f32 %v917_v1, %v922_v4 }
 0x625   :  { %v924_v6 = vsel %vm725_vm3, %v923_v5, 0.0 }
 0x626   :  { %v925_v7 = vmul.f32 %v924_v6, %v924_v6 }
 0x628   :  { %926 = vadd.xlane.f32.xlu2 %v925_v7 }
 0x69b   :  { %v927_v8 = vpop.xlane.xlu2 %926 }
 0x69c   :  { %v928_v9 = vmul.f32 %v927_v8, %v1653_v18  ;;  %v1258_v18 = vld [vmem:[%s1713_s20] ss:$0 sm:$0xff] }
 0x69e   :  { %v929_v10 = vadd.f32 1e-05, %v928_v9 }
 0x6a0   :  { %1263 = vrsqrt.f32 %v929_v10  ;;  %vm936_vm8 = vweird.f32 %v929_v10 }
 0x6a6   :  { %v1264_v11 = vpop.eup %1263 }
 0x6a7   :  { %v931_v12 = vmul.f32 %v1264_v11, %v929_v10  ;;  %vm937_vm7 = vweird.f32 %v1264_v11 }
 0x6a8   :  { %vm938_vm9 = vmor %vm936_vm8, %vm937_vm7 }
 0x6a9   :  { %v932_v13 = vmul.f32 %v1264_v11, %v931_v12 }
 0x6ab   :  { %v933_v14 = vmul.f32 0.5, %v932_v13 }
 0x6ad   :  { %v934_v15 = vsub.f32 1.5, %v933_v14 }
 0x6af   :  { %v935_v16 = vmul.f32 %v1264_v11, %v934_v15 }
 0x6b1   :  { %v939_v19 = vsel %vm938_vm9, %v1264_v11, %v935_v16 }
 0x6b2   :  { %v940_v20 = vmul.f32 %v939_v19, %v924_v6 }
 0x6b4   :  { %v944_v21 = vmul.f32 %v1257_v17, %v940_v20 }
 0x6b6   :  { %v948_v22 = vadd.f32 %v1258_v18, %v944_v21 }
 0x6b8   :  { %949 = vst [vmem:[#allocation18] sm:$0xff] %v948_v22 }
 0x6b9 PF:  { %s952_s0 = sld [smem:[#allocation4]]  ;;  %s1455_s1 = smov [#allocation18]  }
 0x6ba   :  { %s958_s24 = sshll.u32 %s1455_s1, 4  ;;  %s1425_s9 = scalar_lea.hbm %s1714_s21, 8  ;;  %s959_s24 = int_to_ptr.vmem [resolvable:$true] %s958_s24 }
 0x6bf   :  { %s1186_s30 = sshll.u32 %s952_s0, 3 }
 0x6c0   :  { %s956_s22 = scalar_lea.hbm %s1714_s21, %s1186_s30 }
 0x6c1   :  { %s960_s19 = sshll.u32 %s956_s22, 4  ;;  %s961_s19 = int_to_ptr.hbm [resolvable:$true] %s960_s19 }
 0x6c2   :  { %s1421_s8 = sshra.s32 %s961_s19, 4  ;;  %s1422_s8 = int_to_ptr.hbm [resolvable:$true] %s1421_s8 }
 0x6c3   :  { %s1423_s16 = scalar_lea.hbm %s1422_s8, 8  ;;  %p1426_p4 = scmp.lt.s32.totalorder %s1422_s8, %s1714_s21 }
 0x6c4   :  { %p1424_p3 = scmp.ne.s32.totalorder %s1422_s8, %s1423_s16  ;;  %p1427_p5 = scmp.lt.s32.totalorder %s1425_s9, %s1423_s16 }
 0x6c6   :  { %p1428_p6 = por %p1427_p5, %p1426_p4 }
 0x6c8   :  { %p1429_p7 = pnand %p1428_p6, %p1424_p3 }
 0x6ca   :  { %1432 = shalt.err (!%p1429_p7)
}
 0x6cb   :  { %963 = dma.vmem_to_hbm [thread:$0]  %s959_s24, 128, %s961_s19, [#allocation9]  }
 0x6cc   :  { %1441 = dma.done.wait [#allocation9], 128  }
 0x6cd   :  { %1442 = vsyncadd [#allocation9], 4294967168 }
 0x6ce   :  { %968 = vsyncpa [#allocation8], 1 }
 0x6cf   :  { %969 = vsyncpa [#allocation11], 1 }
 0x6d0   :  { %970 = vsyncpa [#allocation14], 1 }
 0x6d1   :  { %971 = vsyncpa [#allocation17], 1 }
 0x6d2   :  { %972 = vsyncpa [#allocation9], 1 }

</bundles_post_ra>
